<compile_context>
chip_gen: v5e
topology: v5e:2x2
jax: 0.10.0
libtpu: 0.0.40
codegen_flags: <defaults>
</compile_context>

<pallas_src>
import jax
import jax.numpy as jnp
from jax.experimental import pallas as pl
from jax.experimental.pallas import tpu as pltpu


_SQRT_2_OVER_PI = 0.7978845608028654


def _gelu_new(x):
    # "gelu_new" tanh approximation (HF ACT2FN["gelu_new"], used by gated T5).
    return 0.5 * x * (1.0 + jnp.tanh(_SQRT_2_OVER_PI * (x + 0.044715 * x * x * x)))


def _t5_gated_ffn_kernel(x_ref, wi0_ref, wi1_ref, wo_ref, o_ref, acc_ref):
    # x_ref:   (tm, d_model)      bf16
    # wi0_ref: (d_model, tf)      bf16
    # wi1_ref: (d_model, tf)      bf16
    # wo_ref:  (tf, d_model)      bf16 (w_l already folded in)
    # o_ref:   (tm, d_model)      output dtype
    # acc_ref: (tm, d_model)      f32 VMEM accumulator (persists across j)
    j = pl.program_id(1)

    @pl.when(j == 0)
    def _():
        acc_ref[...] = jnp.zeros_like(acc_ref)

    x = x_ref[...]
    h_gate = jnp.dot(x, wi0_ref[...], preferred_element_type=jnp.float32)
    h_lin = jnp.dot(x, wi1_ref[...], preferred_element_type=jnp.float32)
    h = _gelu_new(h_gate) * h_lin
    # w_l gate folded into wo in the wrapper (exact); dropout = identity (eval).
    acc_ref[...] += jnp.dot(h.astype(wo_ref.dtype), wo_ref[...],
                            preferred_element_type=jnp.float32)

    @pl.when(j == pl.num_programs(1) - 1)
    def _():
        o_ref[...] = acc_ref[...].astype(o_ref.dtype)


def _round_up(x, m):
    return (x + m - 1) // m * m


def t5_dense_gated_act_dense(x, wi0_t, wi1_t, w_l, wo_t, *,
                             tm=256, tf=512, compute_dtype=jnp.bfloat16):
    """x: [B, S, d_model]; wi0_t/wi1_t: [d_model, d_ff]; w_l: [d_ff];
    wo_t: [d_ff, d_model].  Returns [B, S, d_model] in x.dtype."""
    B, S, d_model = x.shape
    d_ff = wi0_t.shape[1]
    M = B * S

    # Fold the per-d_ff gate into wo (exact: (h*w_l) @ Wo == h @ (diag(w_l) Wo)).
    wo_fold = wo_t.astype(jnp.float32) * w_l.astype(jnp.float32)[:, None]

    # Row tile: multiple of 8, capped by the (padded) row count.
    tm = min(tm, _round_up(M, 8))
    Mp = _round_up(M, tm)
    # d_ff tile: must divide d_ff evenly and be lane-aligned, else use full d_ff.
    if d_ff % tf != 0 or tf % 128 != 0:
        tf = d_ff

    x2d = x.reshape(M, d_model).astype(compute_dtype)
    if Mp != M:
        x2d = jnp.pad(x2d, ((0, Mp - M), (0, 0)))

    wi0_c = wi0_t.astype(compute_dtype)
    wi1_c = wi1_t.astype(compute_dtype)
    wo_c = wo_fold.astype(compute_dtype)

    # VMEM budget: double-buffered input/output tiles + f32 accumulator +
    # (tm, tf) f32 intermediate; keep under v7x's 64 MiB physical VMEM.
    bpe = jnp.dtype(compute_dtype).itemsize
    est = 2 * (tm * d_model * bpe            # x tile
               + 2 * d_model * tf * bpe      # wi0 / wi1 tiles
               + tf * d_model * bpe          # wo tile
               + tm * d_model * bpe)         # out tile
    est += tm * d_model * 4 + tm * tf * 4    # accumulator + intermediate h
    vmem_limit = int(min(max(2 * est, 32 * 1024 * 1024), 64 * 1024 * 1024))

    out2d = pl.pallas_call(
        _t5_gated_ffn_kernel,
        out_shape=jax.ShapeDtypeStruct((Mp, d_model), x.dtype),
        grid_spec=pltpu.PrefetchScalarGridSpec(
            num_scalar_prefetch=0,
            grid=(Mp // tm, d_ff // tf),
            in_specs=[
                pl.BlockSpec((tm, d_model), lambda i, j: (i, 0)),   # x rows
                pl.BlockSpec((d_model, tf), lambda i, j: (0, j)),   # wi0 tile
                pl.BlockSpec((d_model, tf), lambda i, j: (0, j)),   # wi1 tile
                pl.BlockSpec((tf, d_model), lambda i, j: (j, 0)),   # wo tile
            ],
            out_specs=pl.BlockSpec((tm, d_model), lambda i, j: (i, 0)),
            scratch_shapes=[pltpu.VMEM((tm, d_model), jnp.float32)],
        ),
        compiler_params=pltpu.CompilerParams(
            dimension_semantics=("parallel", "arbitrary"),
            vmem_limit_bytes=vmem_limit,
        ),
    )(x2d, wi0_c, wi1_c, wo_c)

    if Mp != M:
        out2d = out2d[:M]
    return out2d.reshape(B, S, d_model)


def reference(x, wi0_t, wi1_t, w_l, wo_t):
    h_g = _gelu_new(jnp.einsum("bsd,df->bsf", x, wi0_t))
    h_l = jnp.einsum("bsd,df->bsf", x, wi1_t)
    h = h_g * h_l * w_l
    # dropout: identity in eval mode
    return jnp.einsum("bsf,fd->bsd", h, wo_t)


if __name__ == "__main__":
    # Small T5-ish config
    batch, seq, d_model, d_ff = 2, 8, 32, 64

    key = jax.random.PRNGKey(0)
    kx, kwi0, kwi1, kwo = jax.random.split(key, 4)

    x = jax.random.normal(kx, (batch, seq, d_model), dtype=jnp.float32)
    # Deterministic parameter init (synthetic, not a checkpoint load).
    wi0_t = (jax.random.normal(kwi0, (d_model, d_ff), dtype=jnp.float32)
             * (1.0 / jnp.sqrt(d_model)))
    wi1_t = (jax.random.normal(kwi1, (d_model, d_ff), dtype=jnp.float32)
             * (1.0 / jnp.sqrt(d_model)))
    wo_t = (jax.random.normal(kwo, (d_ff, d_model), dtype=jnp.float32)
            * (1.0 / jnp.sqrt(d_ff)))
    w_l = jnp.ones((d_ff,), dtype=jnp.float32)  # torch.ones(config.d_ff)

    out = t5_dense_gated_act_dense(x, wi0_t, wi1_t, w_l, wo_t)
    out = jax.block_until_ready(out)

    ref = reference(x, wi0_t, wi1_t, w_l, wo_t)
    assert out.shape == (batch, seq, d_model)
    # bf16 compute path inside the kernel -> looser tolerance vs f32 reference.
    assert jnp.allclose(out.astype(jnp.float32), ref, atol=5e-2, rtol=5e-2), \
        "mismatch vs reference"

    print("KERNEL_OK")
</pallas_src>

<mosaic_0001>
module attributes {stable_mosaic.version = 11 : i64} {
  func.func @_t5_gated_ffn_kernel(%arg0: i32, %arg1: i32, %arg2: memref<16x32xbf16, #tpu.memory_space<vmem>>, %arg3: memref<32x64xbf16, #tpu.memory_space<vmem>>, %arg4: memref<32x64xbf16, #tpu.memory_space<vmem>>, %arg5: memref<64x32xbf16, #tpu.memory_space<vmem>>, %arg6: memref<16x32xf32, #tpu.memory_space<vmem>>, %arg7: memref<16x32xf32, #tpu.memory_space<vmem>>) attributes {dimension_semantics = [#tpu.dimension_semantics<parallel>, #tpu.dimension_semantics<arbitrary>], iteration_bounds = array<i64: 1, 1>, scalar_prefetch = 0 : i64, scratch_operands = 1 : i64, tpu.core_type = #tpu.core_type<tc>, window_params = [{transform_indices = @transform_0, window_bounds = array<i64: 16, 32>}, {transform_indices = @transform_1, window_bounds = array<i64: 32, 64>}, {transform_indices = @transform_2, window_bounds = array<i64: 32, 64>}, {transform_indices = @transform_3, window_bounds = array<i64: 64, 32>}, {transform_indices = @transform_4, window_bounds = array<i64: 16, 32>}]} {
    %c0_i32 = arith.constant 0 : i32
    %0 = arith.cmpi eq, %arg1, %c0_i32 : i32
    %1 = arith.extui %0 : i1 to i32
    %c0_i32_0 = arith.constant 0 : i32
    %2 = arith.cmpi ne, %1, %c0_i32_0 : i32
    scf.if %2 {
      %cst_20 = arith.constant 0.000000e+00 : f32
      %31 = vector.broadcast %cst_20 : f32 to vector<16x32xf32>
      %c0_21 = arith.constant 0 : index
      %c0_22 = arith.constant 0 : index
      %32 = vector.load %arg7[%c0_21, %c0_22] : memref<16x32xf32, #tpu.memory_space<vmem>>, vector<16x32xf32>
      tpu.vector_store %arg7[%c0_21, %c0_22], %31 {strides = array<i32>} : memref<16x32xf32, #tpu.memory_space<vmem>>, vector<16x32xf32>,
    } else {
    }
    %c0 = arith.constant 0 : index
    %c0_1 = arith.constant 0 : index
    %3 = vector.load %arg2[%c0, %c0_1] : memref<16x32xbf16, #tpu.memory_space<vmem>>, vector<16x32xbf16>
    %c0_2 = arith.constant 0 : index
    %c0_3 = arith.constant 0 : index
    %4 = vector.load %arg3[%c0_2, %c0_3] : memref<32x64xbf16, #tpu.memory_space<vmem>>, vector<32x64xbf16>
    %cst = arith.constant dense<0.000000e+00> : vector<16x64xf32>
    %5 = tpu.matmul %3, %4, %cst {dimension_numbers = #tpu.dot_dimension_numbers<[1], [0], [0], [1], [0, 0, 1, 1], [], []>} : vector<16x32xbf16>, vector<32x64xbf16>, vector<16x64xf32> -> vector<16x64xf32>
    %c0_4 = arith.constant 0 : index
    %c0_5 = arith.constant 0 : index
    %6 = vector.load %arg4[%c0_4, %c0_5] : memref<32x64xbf16, #tpu.memory_space<vmem>>, vector<32x64xbf16>
    %cst_6 = arith.constant dense<0.000000e+00> : vector<16x64xf32>
    %7 = tpu.matmul %3, %6, %cst_6 {dimension_numbers = #tpu.dot_dimension_numbers<[1], [0], [0], [1], [0, 0, 1, 1], [], []>} : vector<16x32xbf16>, vector<32x64xbf16>, vector<16x64xf32> -> vector<16x64xf32>
    %cst_7 = arith.constant 5.000000e-01 : f32
    %8 = vector.broadcast %cst_7 : f32 to vector<16x64xf32>
    %9 = arith.mulf %8, %5 : vector<16x64xf32>
    %cst_8 = arith.constant 4.471500e-02 : f32
    %10 = vector.broadcast %cst_8 : f32 to vector<16x64xf32>
    %11 = arith.mulf %10, %5 : vector<16x64xf32>
    %12 = arith.mulf %11, %5 : vector<16x64xf32>
    %13 = arith.mulf %12, %5 : vector<16x64xf32>
    %14 = arith.addf %5, %13 : vector<16x64xf32>
    %cst_9 = arith.constant 0.797884583 : f32
    %15 = vector.broadcast %cst_9 : f32 to vector<16x64xf32>
    %16 = arith.mulf %15, %14 : vector<16x64xf32>
    %17 = math.tanh %16 : vector<16x64xf32>
    %cst_10 = arith.constant 1.000000e+00 : f32
    %18 = vector.broadcast %cst_10 : f32 to vector<16x64xf32>
    %19 = arith.addf %18, %17 : vector<16x64xf32>
    %20 = arith.mulf %9, %19 : vector<16x64xf32>
    %21 = arith.mulf %20, %7 : vector<16x64xf32>
    %c0_11 = arith.constant 0 : index
    %c0_12 = arith.constant 0 : index
    %22 = vector.load %arg7[%c0_11, %c0_12] : memref<16x32xf32, #tpu.memory_space<vmem>>, vector<16x32xf32>
    %23 = arith.truncf %21 : vector<16x64xf32> to vector<16x64xbf16>
    %c0_13 = arith.constant 0 : index
    %c0_14 = arith.constant 0 : index
    %24 = vector.load %arg5[%c0_13, %c0_14] : memref<64x32xbf16, #tpu.memory_space<vmem>>, vector<64x32xbf16>
    %cst_15 = arith.constant dense<0.000000e+00> : vector<16x32xf32>
    %25 = tpu.matmul %23, %24, %cst_15 {dimension_numbers = #tpu.dot_dimension_numbers<[1], [0], [0], [1], [0, 0, 1, 1], [], []>} : vector<16x64xbf16>, vector<64x32xbf16>, vector<16x32xf32> -> vector<16x32xf32>
    %26 = arith.addf %22, %25 : vector<16x32xf32>
    %c0_16 = arith.constant 0 : index
    %c0_17 = arith.constant 0 : index
    %27 = vector.load %arg7[%c0_16, %c0_17] : memref<16x32xf32, #tpu.memory_space<vmem>>, vector<16x32xf32>
    tpu.vector_store %arg7[%c0_16, %c0_17], %26 {strides = array<i32>} : memref<16x32xf32, #tpu.memory_space<vmem>>, vector<16x32xf32>,
    %c0_i32_18 = arith.constant 0 : i32
    %28 = arith.cmpi eq, %arg1, %c0_i32_18 : i32
    %29 = arith.extui %28 : i1 to i32
    %c0_i32_19 = arith.constant 0 : i32
    %30 = arith.cmpi ne, %29, %c0_i32_19 : i32
    scf.if %30 {
      %c0_20 = arith.constant 0 : index
      %c0_21 = arith.constant 0 : index
      %31 = vector.load %arg7[%c0_20, %c0_21] : memref<16x32xf32, #tpu.memory_space<vmem>>, vector<16x32xf32>
      %c0_22 = arith.constant 0 : index
      %c0_23 = arith.constant 0 : index
      %32 = vector.load %arg6[%c0_22, %c0_23] : memref<16x32xf32, #tpu.memory_space<vmem>>, vector<16x32xf32>
      tpu.vector_store %arg6[%c0_22, %c0_23], %31 {strides = array<i32>} : memref<16x32xf32, #tpu.memory_space<vmem>>, vector<16x32xf32>,
    } else {
    }
    return
  }
  func.func @transform_0(%arg0: i32, %arg1: i32) -> (i32, i32) {
    %c0_i32 = arith.constant 0 : i32
    %c0_i32_0 = arith.constant 0 : i32
    return %arg0, %c0_i32 : i32, i32
  }
  func.func @transform_1(%arg0: i32, %arg1: i32) -> (i32, i32) {
    %c0_i32 = arith.constant 0 : i32
    %c0_i32_0 = arith.constant 0 : i32
    return %c0_i32, %arg1 : i32, i32
  }
  func.func @transform_2(%arg0: i32, %arg1: i32) -> (i32, i32) {
    %c0_i32 = arith.constant 0 : i32
    %c0_i32_0 = arith.constant 0 : i32
    return %c0_i32, %arg1 : i32, i32
  }
  func.func @transform_3(%arg0: i32, %arg1: i32) -> (i32, i32) {
    %c0_i32 = arith.constant 0 : i32
    %c0_i32_0 = arith.constant 0 : i32
    return %arg1, %c0_i32 : i32, i32
  }
  func.func @transform_4(%arg0: i32, %arg1: i32) -> (i32, i32) {
    %c0_i32 = arith.constant 0 : i32
    %c0_i32_0 = arith.constant 0 : i32
    return %arg0, %c0_i32 : i32, i32
  }
}

</mosaic_0001>

<bundles_post_ra>
// kernel: tpu_custom_call.1
= control target key start
LH: loop header
LB: loop body
LE: loop exit
PB: predicated region body
PF: predicated region fallthrough
CT: control target
= control target key end

     0   :  { %s348_s0 = inlined_call_operand.vmem [shape: bf16[16,32], index: 0, kind: input, shape index: {}]   ;;  %s349_s1 = inlined_call_operand.vmem [shape: bf16[32,64], index: 1, kind: input, shape index: {}]   ;;  %s350_s2 = inlined_call_operand.vmem [shape: bf16[32,64], index: 2, kind: input, shape index: {}]   ;;  %s351_s3 = inlined_call_operand.vmem [shape: bf16[64,32], index: 3, kind: input, shape index: {}]   ;;  %s352_s4 = inlined_call_operand.hbm [shape: f32[16,32], index: 4, kind: output, shape index: {}]  }
   0x1   :  { %v240_v0 = vld [vmem:[%s349_s1 + $0x8] sm:$0xff] }
   0x2   :  { %v242_v1 = vld [vmem:[%s350_s2 + $0x8] sm:$0xff] }
   0x3   :  { %9 = vsyncpa [#allocation4], 0  ;;  %59 = vmatpush.bf16.msra.mxu0 %v240_v0  ;;  %v239_v2 = vld [vmem:[%s349_s1] sm:$0xff]  ;;  %89 = vmatpush.bf16.msra.mxu1 %v242_v1  ;;  %vm23_vm0 = vcmask 261120   ;;  %v246_v5 = vld [vmem:[%s351_s3 + $0x18] sm:$0xff]  ;;  %v281_v12 = vmov 0.0  }
   0x4   :  { %v241_v3 = vld [vmem:[%s350_s2] sm:$0xff]  ;;  %160 = vmatpush.bf16.msra.mxu2 %v246_v5  ;;  %v245_v6 = vld [vmem:[%s351_s3 + $0x10] sm:$0xff]  ;;  %v244_v7 = vld [vmem:[%s351_s3 + $0x8] sm:$0xff]  ;;  %24 = vst.msk [vmem:[#allocation2] sm:$0xff] %vm23_vm0, %v281_v12  ;;  %vm152_vm1 = vcmask 523264   ;;  %s187_s7 = sshll.u32 %s352_s4, 4  ;;  %s188_s7 = int_to_ptr.hbm [resolvable:$true] %s187_s7 }
   0x5   :  { %v238_v4 = vld [vmem:[%s348_s0] sm:$0xff]  ;;  %25 = vst.msk [vmem:[#allocation2 + $0x8] sm:$0xff] %vm23_vm0, %v281_v12  ;;  %s283_s8 = smov 128   ;;  %s284_s9 = smov 8  }
   0x6   :  { %v243_v8 = vld [vmem:[%s351_s3] sm:$0xff]  ;;  %s282_s3 = smov [#allocation3]  }
   0x7   :  { %60 = vmatpush.bf16.msra.mxu0 %v239_v2  ;;  %90 = vmatpush.bf16.msra.mxu1 %v241_v3  ;;  %s185_s30 = sshll.u32 %s282_s3, 4  ;;  %s186_s30 = int_to_ptr.vmem [resolvable:$true] %s185_s30 }
   0x8   :  { %161 = vmatpush.bf16.msra.mxu2 %v245_v6 }
   0xa   :  { %211 = vmatmul.msk.bf16.vlgmr.msra.gmra.mxu0 %vm23_vm0, %v238_v4  ;;  %220 = vmatmul.msk.bf16.vlgmr.msra.gmra.mxu1 %vm23_vm0, %v238_v4 }
   0xb   :  { %v117_v35 = vld [vmem:[#allocation2] sm:$0xff] }
   0xc   :  { %162 = vmatpush.bf16.msra.mxu2 %v244_v7  ;;  %v118_v38 = vld [vmem:[#allocation2 + $0x8] sm:$0xff] }
  0x10   :  { %163 = vmatpush.bf16.msra.mxu2 %v243_v8 }
  0x87   :  { %v62_v9 = vpop.f32.mrf.mxu0  ;;  %v92_v23 = vpop.f32.mrf.mxu1 }
  0x88   :  { %v99_v10 = vmul.f32 0.044715, %v62_v9  ;;  %v97_v25 = vmul.f32 0.5, %v62_v9 }
  0x8a   :  { %v101_v11 = vmul.f32 %v99_v10, %v62_v9 }
  0x8c   :  { %v103_v13 = vmul.f32 %v101_v11, %v62_v9 }
  0x8e   :  { %v105_v14 = vadd.f32 %v103_v13, %v62_v9 }
  0x8f   :  { %v64_v15 = vpop.f32.mrf.mxu0  ;;  %v94_v31 = vpop.f32.mrf.mxu1 }
  0x90   :  { %v100_v16 = vmul.f32 0.044715, %v64_v15  ;;  %v107_v17 = vmul.f32 0.7978846, %v105_v14  ;;  %v98_v28 = vmul.f32 0.5, %v64_v15 }
  0x92   :  { %v102_v18 = vmul.f32 %v100_v16, %v64_v15  ;;  %251 = vtanh.f32 %v107_v17 }
  0x94   :  { %v104_v19 = vmul.f32 %v102_v18, %v64_v15 }
  0x96   :  { %v106_v20 = vadd.f32 %v104_v19, %v64_v15 }
  0x98   :  { %v108_v21 = vmul.f32 0.7978846, %v106_v20  ;;  %v252_v22 = vpop.eup %251 }
  0x99   :  { %v111_v24 = vadd.f32 1.0, %v252_v22 }
  0x9a   :  { %253 = vtanh.f32 %v108_v21 }
  0x9b   :  { %v113_v27 = vmul.f32 %v111_v24, %v97_v25 }
  0x9d   :  { %v115_v32 = vmul.f32 %v113_v27, %v92_v23 }
  0xa0   :  { %v254_v26 = vpop.eup %253 }
  0xa1   :  { %v112_v29 = vadd.f32 1.0, %v254_v26 }
  0xa3   :  { %v114_v30 = vmul.f32 %v112_v29, %v98_v28 }
  0xa5   :  { %v116_v33 = vmul.f32 %v114_v30, %v94_v31 }
  0xa7   :  { %v119_v34 = vpack.c.bf16 %v116_v33, %v115_v32 }
  0xa9   :  { %237 = vmatmul.msk.bf16.vlgmr.msra.gmra.mxu2 %vm152_vm1, %v119_v34 }
 0x12c   :  { %v165_v36 = vpop.f32.mrf.mxu2 }
 0x12d   :  { %v170_v37 = vadd.f32 %v165_v36, %v117_v35 }
 0x12f   :  { %172 = vst.msk [vmem:[#allocation2] sm:$0xff] %vm23_vm0, %v170_v37 }
 0x134   :  { %v167_v39 = vpop.f32.mrf.mxu2 }
 0x135   :  { %v171_v40 = vadd.f32 %v167_v39, %v118_v38 }
 0x136   :  { %v177_v41 = vld [vmem:[#allocation2] sm:$0xff] }
 0x137   :  { %173 = vst.msk [vmem:[#allocation2 + $0x8] sm:$0xff] %vm23_vm0, %v171_v40 }
 0x138   :  { %179 = vst.msk [vmem:[#allocation3] sm:$0xff] %vm23_vm0, %v177_v41 }
 0x13e   :  { %v178_v42 = vld [vmem:[#allocation2 + $0x8] sm:$0xff] }
 0x13f   :  { %180 = vst.msk [vmem:[#allocation3 + $0x8] sm:$0xff] %vm23_vm0, %v178_v42 }
 0x140   :  { %193 = dma.vmem_to_hbm [thread:$0]  %s186_s30, 256, %s188_s7, [#allocation4], %s283_s8, %s283_s8, %s284_s9  }
 0x141   :  { %279 = dma.done.wait [#allocation4], 256  }
 0x142   :  { %280 = vsyncadd [#allocation4], 4294967040 }
 0x143   :  { %198 = vsyncpa [#allocation4], 1 }

</bundles_post_ra>
